<compile_context>
chip_gen: v7x
topology: tpu7x:2x2x1
jax: 0.10.0
libtpu: 0.0.40
codegen_flags: <defaults>
</compile_context>

<pallas_src>
import functools

import jax
import jax.numpy as jnp
from jax import lax
from jax.experimental import pallas as pl
from jax.experimental.pallas import tpu as pltpu

_SELU_ALPHA = 1.6732632423543772848170429916717
_SELU_SCALE = 1.0507009873554804934193349852946


def _round_up(x, m):
    return ((x + m - 1) // m) * m


def _pick_tile(dim, target, quantum):
    """Largest multiple of `quantum` that divides `dim` and is <= max(target, quantum).

    `dim` must already be a multiple of `quantum`, so a valid tile always exists
    and the problem is never padded up to a tile multiple.
    """
    q = dim // quantum
    t = max(1, min(q, target // quantum))
    best = 1
    for d in range(1, q + 1):
        if q % d == 0 and d <= t:
            best = d
    return best * quantum


def _vmem_capacity_bytes():
    try:
        return int(getattr(pltpu.get_tpu_info(), "vmem_capacity_bytes", 128 << 20))
    except Exception:
        return 128 << 20


def _apply_norm_act(out, g_ref, be_ref, *, norm, activation, eps, out_dim):
    """Epilogue (all in f32): custom LayerNorm + activation."""
    if norm == 'ln':
        # Custom LayerNorm of the reference module: per-row mean and *unbiased*
        # std over features, divide by (std + eps), then per-feature affine.
        # (For a 2-D input the x.size(0)==1 branch is identical to per-row.)
        # Padded lanes (col >= out_dim) are masked out of the statistics.
        n = out_dim
        col = lax.broadcasted_iota(jnp.int32, out.shape, 1)
        valid = col < n
        xm = jnp.where(valid, out, 0.0)
        mean = jnp.sum(xm, axis=-1, keepdims=True) * (1.0 / n)
        cent = jnp.where(valid, out - mean, 0.0)          # centered two-pass variance
        var = jnp.sum(cent * cent, axis=-1, keepdims=True) * (1.0 / max(n - 1, 1))
        std = jnp.sqrt(var)
        out = (out - mean) / (std + eps)                  # exact divide for torch parity
        out = out * g_ref[...].astype(jnp.float32) + be_ref[...].astype(jnp.float32)
    elif norm == 'none':
        pass
    # TODO(synk): 'bn' / 'in' (running-stat BatchNorm1d / InstanceNorm1d) and the 'sn'
    # spectral-norm power-iteration weight update have no clean in-kernel equivalent.

    if activation == 'relu':
        out = jnp.maximum(out, 0.0)
    elif activation == 'lrelu':
        out = jnp.where(out >= 0.0, out, 0.2 * out)
    elif activation == 'tanh':
        out = jnp.tanh(out)
    elif activation == 'selu':
        out = _SELU_SCALE * jnp.where(out > 0.0, out,
                                      _SELU_ALPHA * (jnp.exp(out) - 1.0))
    elif activation == 'none':
        pass
    # TODO(synk): 'prelu' (learned slope parameter) not wired up.
    return out


def _linear_block_single_k_kernel(x_ref, w_ref, b_ref, g_ref, be_ref, o_ref, *,
                                  norm, activation, eps, out_dim):
    # One fused matmul + bias + norm + activation (K fully resident in VMEM).
    out = jnp.dot(x_ref[...], w_ref[...], preferred_element_type=jnp.float32)
    out = out + b_ref[...].astype(jnp.float32)
    out = _apply_norm_act(out, g_ref, be_ref, norm=norm, activation=activation,
                          eps=eps, out_dim=out_dim)
    o_ref[...] = out.astype(o_ref.dtype)


def _linear_block_multi_k_kernel(x_ref, w_ref, b_ref, g_ref, be_ref, o_ref,
                                 *scratch_refs, norm, activation, eps, out_dim):
    # K-tiled path. f32 outputs accumulate directly into the VMEM-resident o_ref
    # (its block index ignores k); narrow outputs use an f32 scratch accumulator.
    acc_ref = scratch_refs[0] if scratch_refs else o_ref
    k = pl.program_id(2)

    @pl.when(k == 0)
    def _init():
        # Fold the bias into the accumulator init (saves an epilogue add).
        acc_ref[...] = jnp.broadcast_to(b_ref[...].astype(acc_ref.dtype),
                                        acc_ref.shape)

    acc_ref[...] += jnp.dot(x_ref[...], w_ref[...],
                            preferred_element_type=jnp.float32)

    @pl.when(k == pl.num_programs(2) - 1)
    def _epilogue():
        out = _apply_norm_act(acc_ref[...].astype(jnp.float32), g_ref, be_ref,
                              norm=norm, activation=activation, eps=eps,
                              out_dim=out_dim)
        o_ref[...] = out.astype(o_ref.dtype)


def linear_block(x, weight, bias, gamma=None, beta=None, *,
                 norm='none', activation='relu', eps=1e-5,
                 compute_dtype=None, tm=None, tn=None, tk=None):
    """Pallas implementation of LinearBlock.forward.

    x:      (B, input_dim)
    weight: (output_dim, input_dim)  -- PyTorch nn.Linear convention
    bias:   (output_dim,)
    gamma/beta: (output_dim,) affine params for norm='ln'
    compute_dtype: optionally stream x / weight in a narrower dtype (e.g. bf16)
        with f32 accumulation.  Numerics-visible; off by default.
    """
    B, in_dim = x.shape
    out_dim, in_dim_w = weight.shape
    assert in_dim_w == in_dim

    if gamma is None:
        gamma = jnp.ones((out_dim,), jnp.float32)
    if beta is None:
        beta = jnp.zeros((out_dim,), jnp.float32)

    out_dtype = x.dtype
    stream_dtype = jnp.dtype(compute_dtype) if compute_dtype is not None else jnp.dtype(x.dtype)
    x_isz = stream_dtype.itemsize
    w_isz = stream_dtype.itemsize
    out_isz = jnp.dtype(out_dtype).itemsize

    # Lane/sublane-dense problem size (multiples of 8 x 128).  Tiles are chosen
    # as exact divisors, so there is no further padding to tile multiples.
    M = _round_up(B, 8)
    N = _round_up(out_dim, 128)
    K = _round_up(in_dim, 128)

    # Generation-aware VMEM budgets (v7x: 64 MiB/TC; v5e/v6e: 128 MiB).
    vmem_cap = _vmem_capacity_bytes()
    if vmem_cap <= (96 << 20):                       # v7x-class
        vmem_limit_cap = min(32 << 20, max(vmem_cap // 2, 8 << 20))
        single_k_budget = 16 << 20
        multi_k_budget = 20 << 20
    else:                                            # v5e / v6e
        vmem_limit_cap = 48 << 20
        single_k_budget = 24 << 20
        multi_k_budget = 28 << 20

    # ---- tile selection (exact divisors of M / N / K) ------------------------
    user_tiles = (tm is not None) or (tn is not None)
    tm = _pick_tile(M, 256 if tm is None else tm, 8)
    if norm == 'ln':
        # LayerNorm needs the full output row at the epilogue -> N un-tiled.
        # TODO(synk): two-pass tiled LayerNorm for very large out_dim (esp. v7x).
        tn = N
    else:
        tn = _pick_tile(N, 512 if tn is None else tn, 128)
        # Keep >= 2 parallel blocks when possible so both v7x TensorCores get work.
        if not user_tiles and (M // tm) * (N // tn) < 2:
            if N // 128 >= 2:
                tn = _pick_tile(N, max(128, tn // 2), 128)
            elif M // 8 >= 2:
                tm = _pick_tile(M, max(8, tm // 2), 8)

    param_bytes = 3 * 2 * tn * 4
    out_buf_bytes = 2 * tm * tn * out_isz

    # Single-K fast path: K fully resident -> no K grid axis at all.
    force_multi = (tk is not None) and (_pick_tile(K, tk, 128) < K)
    fits_single = (2 * (tm * K * x_isz + K * tn * w_isz)
                   + out_buf_bytes + param_bytes) <= single_k_budget
    single_k = (K == 128) or (fits_single and not force_multi)

    use_scratch = jnp.dtype(out_dtype) != jnp.float32   # f32 outputs accumulate in o_ref

    if single_k:
        tk_eff = K
    else:
        tk_target = 1024 if tk is None else tk
        fixed = out_buf_bytes + (tm * tn * 4 if use_scratch else 0) + param_bytes
        per_tk = 2 * (tm * x_isz + tn * w_isz)
        max_tk = max(128, ((multi_k_budget - fixed) // per_tk) // 128 * 128)
        tk_eff = _pick_tile(K, min(tk_target, max_tk), 128)

    # ---- operand layout / padding --------------------------------------------
    def _pad2(a, rows, cols):
        r, c = a.shape
        if (r, c) == (rows, cols):
            return a
        return jnp.pad(a, ((0, rows - r), (0, cols - c)))

    xp = _pad2(x, M, K).astype(stream_dtype)
    # Pre-transpose the weight ONCE in the wrapper to (K, N): the kernel then uses
    # a plain row-by-column contraction -> no per-K-step XLU transpose on the MXU feed.
    wtp = _pad2(weight.T, K, N).astype(stream_dtype)
    bp = _pad2(bias.reshape(1, out_dim).astype(jnp.float32), 1, N)
    gp = _pad2(gamma.reshape(1, out_dim).astype(jnp.float32), 1, N)
    bep = _pad2(beta.reshape(1, out_dim).astype(jnp.float32), 1, N)

    # ---- cost / VMEM bookkeeping ----------------------------------------------
    n_m, n_n = M // tm, N // tn
    transcendentals = M * N if activation in ('tanh', 'selu') else 0
    if norm == 'ln':
        transcendentals += 2 * M   # sqrt + divide per row
    cost = pl.CostEstimate(
        flops=2 * M * N * K,
        transcendentals=transcendentals,
        bytes_accessed=(M * K * x_isz * n_n      # x streamed once per N block
                        + K * N * w_isz * n_m    # weight streamed once per M block
                        + M * N * out_isz
                        + 3 * N * 4))

    footprint = (2 * tm * tk_eff * x_isz + 2 * tk_eff * tn * w_isz
                 + out_buf_bytes
                 + ((tm * tn * 4) if (use_scratch and not single_k) else 0)
                 + param_bytes)
    vmem_limit = int(min(max(2 * footprint, 8 << 20), vmem_limit_cap))

    # ---- pallas_call ------------------------------------------------------------
    if single_k:
        kern = functools.partial(_linear_block_single_k_kernel, norm=norm,
                                 activation=activation, eps=eps, out_dim=out_dim)
        grid = (n_m, n_n)
        in_specs = [
            pl.BlockSpec((tm, K), lambda i, j: (i, 0)),    # x
            pl.BlockSpec((K, tn), lambda i, j: (0, j)),    # weight^T (K, N)
            pl.BlockSpec((1, tn), lambda i, j: (0, j)),    # bias
            pl.BlockSpec((1, tn), lambda i, j: (0, j)),    # gamma
            pl.BlockSpec((1, tn), lambda i, j: (0, j)),    # beta
        ]
        out_spec = pl.BlockSpec((tm, tn), lambda i, j: (i, j))
        scratch = []
        dims = ("parallel", "parallel")
    else:
        kern = functools.partial(_linear_block_multi_k_kernel, norm=norm,
                                 activation=activation, eps=eps, out_dim=out_dim)
        grid = (n_m, n_n, K // tk_eff)
        in_specs = [
            pl.BlockSpec((tm, tk_eff), lambda i, j, k: (i, k)),   # x
            pl.BlockSpec((tk_eff, tn), lambda i, j, k: (k, j)),   # weight^T (K, N)
            pl.BlockSpec((1, tn), lambda i, j, k: (0, j)),        # bias
            pl.BlockSpec((1, tn), lambda i, j, k: (0, j)),        # gamma
            pl.BlockSpec((1, tn), lambda i, j, k: (0, j)),        # beta
        ]
        out_spec = pl.BlockSpec((tm, tn), lambda i, j, k: (i, j))
        scratch = [pltpu.VMEM((tm, tn), jnp.float32)] if use_scratch else []
        dims = ("parallel", "parallel", "arbitrary")

    out_padded = pl.pallas_call(
        kern,
        out_shape=jax.ShapeDtypeStruct((M, N), out_dtype),
        grid_spec=pltpu.PrefetchScalarGridSpec(
            num_scalar_prefetch=0,
            grid=grid,
            in_specs=in_specs,
            out_specs=out_spec,
            scratch_shapes=scratch),
        compiler_params=pltpu.CompilerParams(
            dimension_semantics=dims,
            vmem_limit_bytes=vmem_limit),
        cost_estimate=cost,
    )(xp, wtp, bp, gp, bep)

    return out_padded[:B, :out_dim]


if __name__ == "__main__":
    # --- Case 1: LinearBlock(32, 32, norm='none', activation='relu'), B=2 -----
    B, input_dim, output_dim = 2, 32, 32
    kx, kw, kb = jax.random.split(jax.random.PRNGKey(0), 3)
    x = jax.random.normal(kx, (B, input_dim), dtype=jnp.float32)
    bound = 1.0 / (input_dim ** 0.5)
    weight = jax.random.uniform(kw, (output_dim, input_dim),
                                minval=-bound, maxval=bound, dtype=jnp.float32)
    bias = jax.random.uniform(kb, (output_dim,),
                              minval=-bound, maxval=bound, dtype=jnp.float32)

    out = jax.block_until_ready(
        linear_block(x, weight, bias, norm='none', activation='relu'))
    ref = jnp.maximum(x @ weight.T + bias, 0.0)
    assert out.shape == (B, output_dim)
    assert jnp.allclose(out, ref, atol=1e-4, rtol=1e-4), \
        float(jnp.max(jnp.abs(out - ref)))

    # --- Case 2: LinearBlock(48, 64, norm='ln', activation='tanh'), B=4 -------
    B2, in2, out2 = 4, 48, 64
    k1, k2, k3, k4 = jax.random.split(jax.random.PRNGKey(1), 4)
    x2 = jax.random.normal(k1, (B2, in2), dtype=jnp.float32)
    bnd2 = 1.0 / (in2 ** 0.5)
    w2 = jax.random.uniform(k2, (out2, in2), minval=-bnd2, maxval=bnd2,
                            dtype=jnp.float32)
    b2 = jax.random.uniform(k3, (out2,), minval=-bnd2, maxval=bnd2,
                            dtype=jnp.float32)
    gamma = jax.random.uniform(k4, (out2,), dtype=jnp.float32)
    beta = jnp.zeros((out2,), jnp.float32)

    out_ln = jax.block_until_ready(
        linear_block(x2, w2, b2, gamma, beta, norm='ln', activation='tanh'))
    y = x2 @ w2.T + b2
    mean = y.mean(axis=1, keepdims=True)
    std = jnp.sqrt(jnp.sum((y - mean) ** 2, axis=1, keepdims=True) / (out2 - 1))
    y = (y - mean) / (std + 1e-5)
    y = y * gamma + beta
    ref_ln = jnp.tanh(y)
    assert jnp.allclose(out_ln, ref_ln, atol=5e-3, rtol=5e-3), \
        float(jnp.max(jnp.abs(out_ln - ref_ln)))

    # --- Case 3: multi-K path (f32 accumulates into o_ref), lrelu -------------
    B3, in3, out3 = 64, 640, 300
    q1, q2, q3 = jax.random.split(jax.random.PRNGKey(2), 3)
    x3 = jax.random.normal(q1, (B3, in3), dtype=jnp.float32)
    bnd3 = 1.0 / (in3 ** 0.5)
    w3 = jax.random.uniform(q2, (out3, in3), minval=-bnd3, maxval=bnd3,
                            dtype=jnp.float32)
    b3 = jax.random.uniform(q3, (out3,), minval=-bnd3, maxval=bnd3,
                            dtype=jnp.float32)
    out3_res = jax.block_until_ready(
        linear_block(x3, w3, b3, norm='none', activation='lrelu',
                     tm=32, tn=128, tk=256))
    y3 = x3 @ w3.T + b3
    ref3 = jnp.where(y3 >= 0.0, y3, 0.2 * y3)
    assert out3_res.shape == (B3, out3)
    assert jnp.allclose(out3_res, ref3, atol=2e-3, rtol=2e-3), \
        float(jnp.max(jnp.abs(out3_res - ref3)))

    # --- Case 4: bf16 streaming + multi-K scratch accumulator path ------------
    B4, in4, out4 = 16, 384, 256
    r1, r2, r3 = jax.random.split(jax.random.PRNGKey(3), 3)
    x4 = jax.random.normal(r1, (B4, in4), dtype=jnp.float32).astype(jnp.bfloat16)
    bnd4 = 1.0 / (in4 ** 0.5)
    w4 = jax.random.uniform(r2, (out4, in4), minval=-bnd4, maxval=bnd4,
                            dtype=jnp.float32).astype(jnp.bfloat16)
    b4 = jax.random.uniform(r3, (out4,), minval=-bnd4, maxval=bnd4,
                            dtype=jnp.float32).astype(jnp.bfloat16)
    out4_res = jax.block_until_ready(
        linear_block(x4, w4, b4, norm='none', activation='relu',
                     tm=8, tn=128, tk=128))
    ref4 = jnp.maximum(x4.astype(jnp.float32) @ w4.T.astype(jnp.float32)
                       + b4.astype(jnp.float32), 0.0)
    assert out4_res.shape == (B4, out4)
    assert jnp.allclose(out4_res.astype(jnp.float32), ref4, atol=2e-2, rtol=2e-2), \
        float(jnp.max(jnp.abs(out4_res.astype(jnp.float32) - ref4)))

    print("KERNEL_OK")
</pallas_src>

<mosaic_0001>
module attributes {stable_mosaic.version = 11 : i64} {
  func.func @_linear_block_single_k_kernel(%arg0: i32, %arg1: i32, %arg2: memref<8x128xf32, #tpu.memory_space<vmem>>, %arg3: memref<128x128xf32, #tpu.memory_space<vmem>>, %arg4: memref<1x128xf32, #tpu.memory_space<vmem>>, %arg5: memref<1x128xf32, #tpu.memory_space<vmem>>, %arg6: memref<1x128xf32, #tpu.memory_space<vmem>>, %arg7: memref<8x128xf32, #tpu.memory_space<vmem>>) attributes {dimension_semantics = [#tpu.dimension_semantics<parallel>, #tpu.dimension_semantics<parallel>], iteration_bounds = array<i64: 1, 1>, scalar_prefetch = 0 : i64, scratch_operands = 0 : i64, tpu.core_type = #tpu.core_type<tc>, window_params = [{transform_indices = @transform_0, window_bounds = array<i64: 8, 128>}, {transform_indices = @transform_1, window_bounds = array<i64: 128, 128>}, {transform_indices = @transform_2, window_bounds = array<i64: 1, 128>}, {transform_indices = @transform_3, window_bounds = array<i64: 1, 128>}, {transform_indices = @transform_4, window_bounds = array<i64: 1, 128>}, {transform_indices = @transform_5, window_bounds = array<i64: 8, 128>}]} {
    %c0 = arith.constant 0 : index
    %c0_0 = arith.constant 0 : index
    %0 = vector.load %arg2[%c0, %c0_0] : memref<8x128xf32, #tpu.memory_space<vmem>>, vector<8x128xf32>
    %c0_1 = arith.constant 0 : index
    %c0_2 = arith.constant 0 : index
    %1 = vector.load %arg3[%c0_1, %c0_2] : memref<128x128xf32, #tpu.memory_space<vmem>>, vector<128x128xf32>
    %cst = arith.constant dense<0.000000e+00> : vector<8x128xf32>
    %2 = tpu.matmul %0, %1, %cst {dimension_numbers = #tpu.dot_dimension_numbers<[1], [0], [0], [1], [0, 0, 1, 1], [], []>} : vector<8x128xf32>, vector<128x128xf32>, vector<8x128xf32> -> vector<8x128xf32>
    %c0_3 = arith.constant 0 : index
    %c0_4 = arith.constant 0 : index
    %3 = vector.load %arg4[%c0_3, %c0_4] : memref<1x128xf32, #tpu.memory_space<vmem>>, vector<1x128xf32>
    %4 = vector.broadcast %3 : vector<1x128xf32> to vector<8x128xf32>
    %5 = arith.addf %2, %4 : vector<8x128xf32>
    %cst_5 = arith.constant 0.000000e+00 : f32
    %6 = vector.broadcast %cst_5 : f32 to vector<8x128xf32>
    %7 = arith.maximumf %5, %6 : vector<8x128xf32>
    %c0_6 = arith.constant 0 : index
    %c0_7 = arith.constant 0 : index
    %8 = vector.load %arg7[%c0_6, %c0_7] : memref<8x128xf32, #tpu.memory_space<vmem>>, vector<8x128xf32>
    tpu.vector_store %arg7[%c0_6, %c0_7], %7 {strides = array<i32>} : memref<8x128xf32, #tpu.memory_space<vmem>>, vector<8x128xf32>,
    return
  }
  func.func @transform_0(%arg0: i32, %arg1: i32) -> (i32, i32) {
    %c0_i32 = arith.constant 0 : i32
    %c0_i32_0 = arith.constant 0 : i32
    return %arg0, %c0_i32 : i32, i32
  }
  func.func @transform_1(%arg0: i32, %arg1: i32) -> (i32, i32) {
    %c0_i32 = arith.constant 0 : i32
    %c0_i32_0 = arith.constant 0 : i32
    return %c0_i32, %arg1 : i32, i32
  }
  func.func @transform_2(%arg0: i32, %arg1: i32) -> (i32, i32) {
    %c0_i32 = arith.constant 0 : i32
    %c0_i32_0 = arith.constant 0 : i32
    return %c0_i32, %arg1 : i32, i32
  }
  func.func @transform_3(%arg0: i32, %arg1: i32) -> (i32, i32) {
    %c0_i32 = arith.constant 0 : i32
    %c0_i32_0 = arith.constant 0 : i32
    return %c0_i32, %arg1 : i32, i32
  }
  func.func @transform_4(%arg0: i32, %arg1: i32) -> (i32, i32) {
    %c0_i32 = arith.constant 0 : i32
    %c0_i32_0 = arith.constant 0 : i32
    return %c0_i32, %arg1 : i32, i32
  }
  func.func @transform_5(%arg0: i32, %arg1: i32) -> (i32, i32) {
    %c0_i32 = arith.constant 0 : i32
    return %arg0, %arg1 : i32, i32
  }
}

</mosaic_0001>

<bundles_post_ra>
// kernel: tpu_custom_call.1
= control target key start
LH: loop header
LB: loop body
LE: loop exit
PB: predicated region body
PF: predicated region fallthrough
CT: control target
= control target key end

     0   :  { %10 = vsyncpa [#allocation3], 0  ;;  %s400_s0 = inlined_call_operand.hbm [shape: f32[8,128], index: 0, kind: input, shape index: {}]   ;;  %s401_s1 = inlined_call_operand.hbm [shape: f32[128,128], index: 1, kind: input, shape index: {}]   ;;  %s402_s2 = inlined_call_operand.vmem [shape: f32[1,128], index: 2, kind: input, shape index: {}]   ;;  %s403_s3 = inlined_call_operand.vmem [shape: f32[1,128], index: 3, kind: input, shape index: {}]   ;;  %s404_s4 = inlined_call_operand.vmem [shape: f32[1,128], index: 4, kind: input, shape index: {}]   ;;  %s405_s5 = inlined_call_operand.hbm [shape: f32[8,128], index: 5, kind: output, shape index: {}]  }
   0x1   :  { %11 = vsyncpa [#allocation6], 0 }
   0x2   :  { %12 = vsyncpa [#allocation4], 0  ;;  %s316_s18 = smov [#allocation2]   ;;  %s317_s20 = smov [#allocation5]  }
   0x3   :  { %s19_s19 = sshll.u32 %s316_s18, 4  ;;  %s28_s21 = sshll.u32 %s317_s20, 4  ;;  %s20_s19 = int_to_ptr.vmem [resolvable:$true] %s19_s19  ;;  %s354_s21 = int_to_ptr.vmem [resolvable:$true] %s28_s21 }
   0x4   :  { %s244_s3 = scalar_lea.hbm %s400_s0, 128 }
   0x5   :  { %p245_p0 = scmp.ne.s32.totalorder %s400_s0, %s244_s3  ;;  %p248_p1 = scmp.lt.u32.totalorder %s244_s3, %s400_s0 }
   0x7   :  { %p250_p2 = pnand %p248_p1, %p245_p0 }
   0x9   :  { %253 = shalt.err (!%p250_p2)
}
   0xa   :  { %s254_s27 = scalar_lea.vmem %s20_s19, 128  ;;  %p259_p4 = scmp.lt.s32.totalorder %s20_s19, %s20_s19 }
   0xb   :  { %p255_p3 = scmp.ne.s32.totalorder %s20_s19, %s254_s27  ;;  %p260_p5 = scmp.lt.s32.totalorder %s254_s27, %s254_s27 }
   0xd   :  { %p261_p6 = por %p260_p5, %p259_p4 }
   0xf   :  { %p262_p7 = pnand %p261_p6, %p255_p3 }
  0x11   :  { %265 = shalt.err (!%p262_p7)
}
  0x12   :  { %22 = dma.hbm_to_vmem [thread:$0]  %s400_s0, 128, %s20_s19, [#allocation3]  }
  0x13   :  { %s266_s7 = scalar_lea.hbm %s401_s1, 2048 }
  0x14   :  { %p267_p8 = scmp.ne.s32.totalorder %s401_s1, %s266_s7  ;;  %p270_p9 = scmp.lt.u32.totalorder %s266_s7, %s401_s1 }
  0x16   :  { %p272_p10 = pnand %p270_p9, %p267_p8 }
  0x18   :  { %275 = shalt.err (!%p272_p10)
}
  0x19   :  { %s276_s12 = scalar_lea.vmem %s354_s21, 2048  ;;  %p281_p12 = scmp.lt.s32.totalorder %s354_s21, %s354_s21 }
  0x1a   :  { %p277_p11 = scmp.ne.s32.totalorder %s354_s21, %s276_s12  ;;  %p282_p13 = scmp.lt.s32.totalorder %s276_s12, %s276_s12 }
  0x1c   :  { %p283_p0 = por %p282_p13, %p281_p12 }
  0x1e   :  { %p284_p1 = pnand %p283_p0, %p277_p11 }
  0x20   :  { %287 = shalt.err (!%p284_p1)
}
  0x21   :  { %s318_s0 = smov 128   ;;  %s319_s13 = smov 8  }
  0x22   :  { %34 = dma.hbm_to_vmem [thread:$0]  %s401_s1, 2048, %s354_s21, [#allocation6], %s318_s0, %s318_s0, %s319_s13  }
  0x23   :  { %310 = dma.done.wait [#allocation3], 128  }
  0x24   :  { %311 = vsyncadd [#allocation3], 4294967168 }
  0x25   :  { %312 = dma.done.wait [#allocation6], 2048  }
  0x26   :  { %313 = vsyncadd [#allocation6], 4294965248  ;;  %v320_v0 = vmov 0.0|0.0   ;;  %vm321_vm0 = vmmov 0   ;;  %v322_v1 = vmov 0.0   ;;  %v48_v2 = vld [vmem:[#allocation5] sm:$0xff] }
  0x27   :  { %212 = vmatprep.subr.bf16.mxu0 %v320_v0  ;;  %209 = vmatprep.mubr.msk.f32.mxu0 %vm321_vm0, %v322_v1  ;;  %v49_v3 = vld [vmem:[#allocation5 + $0x8] sm:$0xff]  ;;  %v50_v4 = vld [vmem:[#allocation5 + $0x10] sm:$0xff]  ;;  %v51_v6 = vld [vmem:[#allocation5 + $0x18] sm:$0xff]  ;;  %s323_s17 = smov [#allocation7]  }
  0x28   :  { %v213_v5 = vpack.c.bf16 %v49_v3, %v48_v2  ;;  %v216_v7 = vpack.c.bf16 %v51_v6, %v50_v4  ;;  %v52_v8 = vld [vmem:[#allocation5 + $0x20] sm:$0xff]  ;;  %v53_v9 = vld [vmem:[#allocation5 + $0x28] sm:$0xff]  ;;  %v54_v11 = vld [vmem:[#allocation5 + $0x30] sm:$0xff]  ;;  %s149_s18 = sshll.u32 %s323_s17, 4  ;;  %s150_s18 = int_to_ptr.vmem [resolvable:$true] %s149_s18 }
  0x29   :  { %v219_v10 = vpack.c.bf16 %v53_v9, %v52_v8  ;;  %v55_v12 = vld [vmem:[#allocation5 + $0x38] sm:$0xff]  ;;  %v56_v14 = vld [vmem:[#allocation5 + $0x40] sm:$0xff]  ;;  %v57_v15 = vld [vmem:[#allocation5 + $0x48] sm:$0xff]  ;;  %s288_s19 = scalar_lea.vmem %s150_s18, 128  ;;  %p293_p3 = scmp.lt.s32.totalorder %s150_s18, %s150_s18 }
  0x2a   :  { %214 = vmatpush3.bf16.msra.mxu0 %v213_v5  ;;  %v222_v13 = vpack.c.bf16 %v55_v12, %v54_v11  ;;  %v225_v16 = vpack.c.bf16 %v57_v15, %v56_v14  ;;  %v58_v17 = vld [vmem:[#allocation5 + $0x50] sm:$0xff]  ;;  %v59_v18 = vld [vmem:[#allocation5 + $0x58] sm:$0xff]  ;;  %v60_v20 = vld [vmem:[#allocation5 + $0x60] sm:$0xff]  ;;  %p289_p2 = scmp.ne.s32.totalorder %s150_s18, %s288_s19  ;;  %p294_p4 = scmp.lt.s32.totalorder %s288_s19, %s288_s19 }
  0x2b   :  { %215 = vmatprep.subr.bf16.mxu0 %v320_v0  ;;  %v228_v19 = vpack.c.bf16 %v59_v18, %v58_v17  ;;  %v61_v21 = vld [vmem:[#allocation5 + $0x68] sm:$0xff]  ;;  %v62_v23 = vld [vmem:[#allocation5 + $0x70] sm:$0xff]  ;;  %v63_v24 = vld [vmem:[#allocation5 + $0x78] sm:$0xff] }
  0x2c   :  { %v231_v22 = vpack.c.bf16 %v61_v21, %v60_v20  ;;  %v234_v25 = vpack.c.bf16 %v63_v24, %v62_v23  ;;  %v47_v26 = vld [vmem:[#allocation2] sm:$0xff]  ;;  %p295_p5 = por %p294_p4, %p293_p3 }
  0x2d   :  { %v159_v27 = vld [vmem:[%s402_s2] ss:$0 sm:$0xff] }
  0x2e   :  { %217 = vmatpush3.bf16.msra.mxu0 %v216_v7  ;;  %p296_p6 = pnand %p295_p5, %p289_p2 }
  0x2f   :  { %218 = vmatprep.subr.bf16.mxu0 %v320_v0 }
  0x32   :  { %220 = vmatpush3.bf16.msra.mxu0 %v219_v10 }
  0x33   :  { %221 = vmatprep.subr.bf16.mxu0 %v320_v0 }
  0x36   :  { %223 = vmatpush3.bf16.msra.mxu0 %v222_v13 }
  0x37   :  { %224 = vmatprep.subr.bf16.mxu0 %v320_v0 }
  0x3a   :  { %226 = vmatpush3.bf16.msra.mxu0 %v225_v16 }
  0x3b   :  { %227 = vmatprep.subr.bf16.mxu0 %v320_v0 }
  0x3e   :  { %229 = vmatpush3.bf16.msra.mxu0 %v228_v19 }
  0x3f   :  { %230 = vmatprep.subr.bf16.mxu0 %v320_v0 }
  0x42   :  { %232 = vmatpush3.bf16.msra.mxu0 %v231_v22 }
  0x43   :  { %233 = vmatprep.subr.bf16.mxu0 %v320_v0 }
  0x46   :  { %235 = vmatpush3.bf16.msra.mxu0 %v234_v25 }
  0x49   :  { %210 = vmatmul.mubr.f32.vlgmr.msra.gmra.mrb[0].mxu0 %v47_v26 }
 0x11c   :  { %v137_v28 = vpop.f32.mrb[0].mxu0 }
 0x11d   :  { %v138_v29 = vadd.f32 %v159_v27, %v137_v28  ;;  %v211_v30 = vpop.f32.mrb[1].mxu0 }
 0x11f   :  { %v141_v31 = vmax.f32 %v138_v29, 0.0 }
 0x121   :  { %142 = vst [vmem:[#allocation7] sm:$0xff] %v141_v31 }
 0x122   :  { %299 = shalt.err (!%p296_p6)
}
 0x123   :  { %s300_s22 = scalar_lea.hbm %s405_s5, 128 }
 0x124   :  { %p301_p7 = scmp.ne.s32.totalorder %s405_s5, %s300_s22  ;;  %p304_p8 = scmp.lt.u32.totalorder %s300_s22, %s405_s5 }
 0x126   :  { %p306_p9 = pnand %p304_p8, %p301_p7 }
 0x128   :  { %309 = shalt.err (!%p306_p9)
}
 0x129   :  { %152 = dma.vmem_to_hbm [thread:$0]  %s150_s18, 128, %s405_s5, [#allocation4]  }
 0x12a   :  { %314 = dma.done.wait [#allocation4], 128  }
 0x12b   :  { %315 = vsyncadd [#allocation4], 4294967168 }
 0x12c   :  { %156 = vsyncpa [#allocation3], 1 }
 0x12d   :  { %157 = vsyncpa [#allocation6], 1 }
 0x12e   :  { %158 = vsyncpa [#allocation4], 1 }

</bundles_post_ra>
